<compile_context>
chip_gen: v7x
topology: tpu7x:2x2x1
jax: 0.10.0
libtpu: 0.0.40
codegen_flags: <defaults>
</compile_context>

<pallas_src>
import functools

import jax
import jax.numpy as jnp
import numpy as np
from jax import lax
from jax.experimental import pallas as pl
from jax.experimental.pallas import tpu as pltpu

_BLOCK_BUDGET_BYTES = 2 * 1024 * 1024   # per-block x tile (f32); in+out double-buffered ~8 MiB
_MAX_BLOCK_BATCH = 16                   # bound the per-sample unroll inside the kernel


def _sigmoid(x):
    # Exact sigmoid via a single EUP tanh plus cheap VALU mul/add (no
    # approximate reciprocal -> matches the reference to ~1e-6).
    return 0.5 * (jnp.tanh(0.5 * x) + 1.0)


def _cbam_kernel(x_ref, w1t_ref, b1_ref, w2t_ref, b2_ref, wma_ref, wmm_ref,
                 cb_ref, out_ref, *, W, KH, KW):
    """Fused CBAM forward for one block of Nb samples.

    x_ref:   (Nb, C, HW)   input activation (lane-dense)
    w1t_ref: (Cr, C)       fc1 weight (transposed)
    b1_ref:  (Cr, 1)       fc1 bias (column)
    w2t_ref: (C, Cr)       fc2 weight (transposed)
    b2_ref:  (C, 1)        fc2 bias (column)
    wma_ref: (KH*KW, HW)   spatial conv weight x boundary mask, avg channel
    wmm_ref: (KH*KW, HW)   spatial conv weight x boundary mask, max channel
    cb_ref:  (1,) SMEM     spatial conv bias
    out_ref: (Nb, C, HW)   output
    """
    Nb, C, HW = x_ref.shape
    f32 = jnp.float32
    hi = jax.lax.Precision.HIGHEST

    # ---- ChannelGate pooling: per-sample lane reductions -> (C, 2*Nb) ------
    avg_cols, max_cols = [], []
    for n in range(Nb):
        xs = x_ref[n].astype(f32)                                 # (C, HW)
        avg_cols.append(jnp.mean(xs, axis=1, keepdims=True))      # (C, 1)
        max_cols.append(jnp.max(xs, axis=1, keepdims=True))       # (C, 1)
    pools = jnp.concatenate(avg_cols + max_cols, axis=1)          # (C, 2*Nb)

    # ---- Shared MLP, batched across both pool branches and all samples -----
    h = jnp.maximum(
        jnp.dot(w1t_ref[...], pools,
                preferred_element_type=f32, precision=hi) + b1_ref[...], 0.0)
    o = jnp.dot(w2t_ref[...], h,
                preferred_element_type=f32, precision=hi) + b2_ref[...]
    scale_c = _sigmoid(o[:, :Nb] + o[:, Nb:])                     # (C, Nb)

    # ---- Channel-scale (staged in out_ref -> bounded live ranges) ----------
    # ---- and ChannelPool (mean/max over channels), sublane-packed ----------
    cp_avg_rows, cp_max_rows = [], []
    for n in range(Nb):
        xcg = x_ref[n].astype(f32) * scale_c[:, n:n + 1]          # (C, HW)
        out_ref[n] = xcg.astype(out_ref.dtype)
        cp_avg_rows.append(jnp.mean(xcg, axis=0, keepdims=True))  # (1, HW)
        cp_max_rows.append(jnp.max(xcg, axis=0, keepdims=True))   # (1, HW)
    # Rows [0, Nb) = avg maps, rows [Nb, 2*Nb) = max maps.
    cp = jnp.concatenate(cp_avg_rows + cp_max_rows, axis=0)       # (2*Nb, HW)

    # ---- SpatialGate: KxK "same" conv via lane rolls shared by all rows ----
    # Boundary masks are pre-folded into wma/wmm, so each tap is one XLU roll
    # + one select + one FMA on the full (2*Nb, HW) sublane stack.
    row = lax.broadcasted_iota(jnp.int32, (2 * Nb, 1), 0)
    is_avg = row < Nb
    rh, rw = KH // 2, KW // 2
    acc0 = jnp.zeros((2 * Nb, HW), f32)    # two accumulator chains -> VALU ILP
    acc1 = jnp.zeros((2 * Nb, HW), f32)
    for ky in range(KH):
        for kx in range(KW):
            oy, ox = ky - rh, kx - rw
            shift = (-(oy * W + ox)) % HW
            shifted = pltpu.roll(cp, shift, 1) if shift else cp
            k = ky * KW + kx
            wk = jnp.where(is_avg,
                           wma_ref[pl.ds(k, 1), :],
                           wmm_ref[pl.ds(k, 1), :])               # (2*Nb, HW)
            if k % 2 == 0:
                acc0 = acc0 + shifted * wk
            else:
                acc1 = acc1 + shifted * wk
    acc = acc0 + acc1                                             # (2*Nb, HW)
    scale_sp = _sigmoid(acc[:Nb, :] + acc[Nb:, :] + cb_ref[0])    # (Nb, HW)

    # ---- Apply spatial gate (read-modify-write the staged activation) ------
    for n in range(Nb):
        out_ref[n] = (out_ref[n].astype(f32)
                      * scale_sp[n:n + 1, :]).astype(out_ref.dtype)


def _pick_block_batch(N, C, HW):
    per_sample = C * HW * 4
    nb = int(min(N, max(1, _BLOCK_BUDGET_BYTES // per_sample), _MAX_BLOCK_BATCH))
    # Prefer >=2 grid steps (keeps both v7x TensorCores fed through the
    # "parallel" batch axis) as long as blocks keep >=4 samples of sublane
    # packing for the spatial-gate roll chain.
    if nb == N and N > 1 and (N + 1) // 2 >= 4:
        nb = (N + 1) // 2
    return nb


def cbam_forward(x, params):
    N, C, H, W = x.shape
    HW = H * W
    Cr = params["w1"].shape[1]
    _, _, KH, KW = params["conv_w"].shape

    nb = _pick_block_batch(N, C, HW)
    n_blocks = -(-N // nb)
    n_pad = n_blocks * nb

    x_flat = x.reshape(N, C, HW)           # keep native dtype over HBM
    if n_pad != N:
        x_flat = jnp.pad(x_flat, ((0, n_pad - N), (0, 0), (0, 0)))

    w1t = params["w1"].T.astype(jnp.float32)                      # (Cr, C)
    b1c = params["b1"].reshape(Cr, 1).astype(jnp.float32)
    w2t = params["w2"].T.astype(jnp.float32)                      # (C, Cr)
    b2c = params["b2"].reshape(C, 1).astype(jnp.float32)
    cb = params["conv_b"].reshape(1).astype(jnp.float32)

    # Fold the KxK "same"-padding boundary masks into the spatial-conv
    # weights once, outside the kernel: wma[k, p] = w[avg, ky, kx] * valid(p).
    # The in-kernel tap body then needs no iota/compare/select mask math.
    conv_w = params["conv_w"].astype(jnp.float32).reshape(2, KH * KW)
    pos = jnp.arange(HW, dtype=jnp.int32)
    hh, ww = pos // W, pos % W
    rh, rw = KH // 2, KW // 2
    rows_a, rows_m = [], []
    for ky in range(KH):
        for kx in range(KW):
            oy, ox = ky - rh, kx - rw
            valid = ((hh + oy >= 0) & (hh + oy < H) &
                     (ww + ox >= 0) & (ww + ox < W)).astype(jnp.float32)
            k = ky * KW + kx
            rows_a.append(conv_w[0, k] * valid)
            rows_m.append(conv_w[1, k] * valid)
    wma = jnp.stack(rows_a)                                       # (KH*KW, HW)
    wmm = jnp.stack(rows_m)                                       # (KH*KW, HW)

    kernel = functools.partial(_cbam_kernel, W=W, KH=KH, KW=KW)

    out_flat = pl.pallas_call(
        kernel,
        out_shape=jax.ShapeDtypeStruct((n_pad, C, HW), x.dtype),
        grid=(n_blocks,),
        in_specs=[
            pl.BlockSpec((nb, C, HW), lambda n: (n, 0, 0)),       # x block
            pl.BlockSpec((Cr, C), lambda n: (0, 0)),              # w1t
            pl.BlockSpec((Cr, 1), lambda n: (0, 0)),              # b1
            pl.BlockSpec((C, Cr), lambda n: (0, 0)),              # w2t
            pl.BlockSpec((C, 1), lambda n: (0, 0)),               # b2
            pl.BlockSpec((KH * KW, HW), lambda n: (0, 0)),        # masked w, avg
            pl.BlockSpec((KH * KW, HW), lambda n: (0, 0)),        # masked w, max
            pl.BlockSpec(memory_space=pltpu.MemorySpace.SMEM),    # conv bias
        ],
        out_specs=pl.BlockSpec((nb, C, HW), lambda n: (n, 0, 0)),
        compiler_params=pltpu.CompilerParams(
            dimension_semantics=("parallel",),
            vmem_limit_bytes=32 * 1024 * 1024),
        cost_estimate=pl.CostEstimate(
            flops=int(N * HW * (6 * C + 4 * KH * KW) + 8 * N * C * Cr),
            transcendentals=int(N * (C + HW)),
            bytes_accessed=int(2 * N * C * HW * 4)),
    )(x_flat, w1t, b1c, w2t, b2c, wma, wmm, cb)

    if n_pad != N:
        out_flat = out_flat[:N]
    return out_flat.reshape(N, C, H, W)


# ----------------------------------------------------------------------------
# Pure-JAX reference (mirrors the PyTorch CBAMModule.forward) for validation
# ----------------------------------------------------------------------------
def cbam_reference(x, params):
    hi = jax.lax.Precision.HIGHEST
    avg = jnp.mean(x, axis=(2, 3))
    mx = jnp.max(x, axis=(2, 3))

    def mlp(p):
        hidden = jnp.maximum(
            jnp.dot(p, params["w1"], precision=hi) + params["b1"], 0.0)
        return jnp.dot(hidden, params["w2"], precision=hi) + params["b2"]

    scale_c = jax.nn.sigmoid(mlp(avg) + mlp(mx))
    xcg = x * scale_c[:, :, None, None]

    cp = jnp.concatenate([jnp.mean(xcg, axis=1, keepdims=True),
                          jnp.max(xcg, axis=1, keepdims=True)], axis=1)
    kh, kw = params["conv_w"].shape[2:]
    conv = jax.lax.conv_general_dilated(
        cp, params["conv_w"], window_strides=(1, 1),
        padding=((kh // 2, kh // 2), (kw // 2, kw // 2)),
        dimension_numbers=("NCHW", "OIHW", "NCHW"), precision=hi)
    conv = conv + params["conv_b"][None, :, None, None]
    return xcg * jax.nn.sigmoid(conv)


if __name__ == "__main__":
    # CBAMModule(channels=16, reduction=4, attention_kernel_size=3,
    #            position_encode=False)
    N, C, H, W = 2, 16, 16, 16
    reduction = 4
    Cr = C // reduction
    K = 3

    key = jax.random.PRNGKey(0)
    ks = jax.random.split(key, 7)
    params = {
        "w1": jax.random.normal(ks[0], (C, Cr), jnp.float32) * 0.3,
        "b1": jax.random.normal(ks[1], (Cr,), jnp.float32) * 0.1,
        "w2": jax.random.normal(ks[2], (Cr, C), jnp.float32) * 0.3,
        "b2": jax.random.normal(ks[3], (C,), jnp.float32) * 0.1,
        "conv_w": jax.random.normal(ks[4], (1, 2, K, K), jnp.float32) * 0.3,
        "conv_b": jax.random.normal(ks[5], (1,), jnp.float32) * 0.1,
    }
    x = jax.random.normal(ks[6], (N, C, H, W), jnp.float32)

    out = jax.block_until_ready(jax.jit(cbam_forward)(x, params))
    ref = jax.block_until_ready(cbam_reference(x, params))

    assert out.shape == x.shape and out.dtype == jnp.float32
    np.testing.assert_allclose(np.asarray(out), np.asarray(ref),
                               atol=2e-3, rtol=2e-3)
    print("KERNEL_OK")
</pallas_src>

<mosaic_0001>
module attributes {stable_mosaic.version = 11 : i64} {
  func.func @_cbam_kernel(%arg0: i32, %arg1: memref<2x16x256xf32, #tpu.memory_space<vmem>>, %arg2: memref<4x16xf32, #tpu.memory_space<vmem>>, %arg3: memref<4x1xf32, #tpu.memory_space<vmem>>, %arg4: memref<16x4xf32, #tpu.memory_space<vmem>>, %arg5: memref<16x1xf32, #tpu.memory_space<vmem>>, %arg6: memref<9x256xf32, #tpu.memory_space<vmem>>, %arg7: memref<9x256xf32, #tpu.memory_space<vmem>>, %arg8: memref<1xf32, #tpu.memory_space<smem>>, %arg9: memref<2x16x256xf32, #tpu.memory_space<vmem>>) attributes {dimension_semantics = [#tpu.dimension_semantics<parallel>], iteration_bounds = array<i64: 1>, scalar_prefetch = 0 : i64, scratch_operands = 0 : i64, tpu.core_type = #tpu.core_type<tc>, window_params = [{transform_indices = @transform_0, window_bounds = array<i64: 2, 16, 256>}, {pipeline_mode = #tpu.pipeline_mode<synchronous>, transform_indices = @transform_1, window_bounds = array<i64: 4, 16>}, {pipeline_mode = #tpu.pipeline_mode<synchronous>, transform_indices = @transform_2, window_bounds = array<i64: 4, 1>}, {pipeline_mode = #tpu.pipeline_mode<synchronous>, transform_indices = @transform_3, window_bounds = array<i64: 16, 4>}, {pipeline_mode = #tpu.pipeline_mode<synchronous>, transform_indices = @transform_4, window_bounds = array<i64: 16, 1>}, {pipeline_mode = #tpu.pipeline_mode<synchronous>, transform_indices = @transform_5, window_bounds = array<i64: 9, 256>}, {pipeline_mode = #tpu.pipeline_mode<synchronous>, transform_indices = @transform_6, window_bounds = array<i64: 9, 256>}, {transform_indices = @transform_7, window_bounds = array<i64: 1>}, {transform_indices = @transform_8, window_bounds = array<i64: 2, 16, 256>}]} {
    %c0 = arith.constant 0 : index
    %c0_0 = arith.constant 0 : index
    %c0_1 = arith.constant 0 : index
    %0 = vector.load %arg1[%c0, %c0_0, %c0_1] : memref<2x16x256xf32, #tpu.memory_space<vmem>>, vector<1x16x256xf32>
    %1 = vector.shape_cast %0 : vector<1x16x256xf32> to vector<16x256xf32>
    %cst = arith.constant dense<0.000000e+00> : vector<16xf32>
    %2 = vector.multi_reduction <add>, %1, %cst [1] : vector<16x256xf32> to vector<16xf32>
    %3 = vector.shape_cast %2 : vector<16xf32> to vector<16x1xf32>
    %cst_2 = arith.constant 2.560000e+02 : f32
    %4 = vector.broadcast %cst_2 : f32 to vector<16x1xf32>
    %5 = arith.divf %3, %4 : vector<16x1xf32>
    %cst_3 = arith.constant dense<0xFF800000> : vector<16xf32>
    %6 = vector.multi_reduction <maximumf>, %1, %cst_3 [1] : vector<16x256xf32> to vector<16xf32>
    %7 = vector.shape_cast %6 : vector<16xf32> to vector<16x1xf32>
    %c1 = arith.constant 1 : index
    %c0_4 = arith.constant 0 : index
    %c0_5 = arith.constant 0 : index
    %8 = vector.load %arg1[%c1, %c0_4, %c0_5] : memref<2x16x256xf32, #tpu.memory_space<vmem>>, vector<1x16x256xf32>
    %9 = vector.shape_cast %8 : vector<1x16x256xf32> to vector<16x256xf32>
    %cst_6 = arith.constant dense<0.000000e+00> : vector<16xf32>
    %10 = vector.multi_reduction <add>, %9, %cst_6 [1] : vector<16x256xf32> to vector<16xf32>
    %11 = vector.shape_cast %10 : vector<16xf32> to vector<16x1xf32>
    %cst_7 = arith.constant 2.560000e+02 : f32
    %12 = vector.broadcast %cst_7 : f32 to vector<16x1xf32>
    %13 = arith.divf %11, %12 : vector<16x1xf32>
    %cst_8 = arith.constant dense<0xFF800000> : vector<16xf32>
    %14 = vector.multi_reduction <maximumf>, %9, %cst_8 [1] : vector<16x256xf32> to vector<16xf32>
    %15 = vector.shape_cast %14 : vector<16xf32> to vector<16x1xf32>
    %16 = tpu.concatenate %5, %13, %7, %15 in 1 : vector<16x1xf32>, vector<16x1xf32>, vector<16x1xf32>, vector<16x1xf32> -> vector<16x4xf32>
    %c0_9 = arith.constant 0 : index
    %c0_10 = arith.constant 0 : index
    %17 = vector.load %arg2[%c0_9, %c0_10] : memref<4x16xf32, #tpu.memory_space<vmem>>, vector<4x16xf32>
    %cst_11 = arith.constant dense<0.000000e+00> : vector<4x4xf32>
    %18 = tpu.matmul %17, %16, %cst_11 {dimension_numbers = #tpu.dot_dimension_numbers<[1], [0], [0], [1], [0, 0, 1, 1], [], []>, precision = #tpu.contract_precision<fp32>} : vector<4x16xf32>, vector<16x4xf32>, vector<4x4xf32> -> vector<4x4xf32>
    %c0_12 = arith.constant 0 : index
    %c0_13 = arith.constant 0 : index
    %19 = vector.load %arg3[%c0_12, %c0_13] : memref<4x1xf32, #tpu.memory_space<vmem>>, vector<4x1xf32>
    %20 = vector.broadcast %19 : vector<4x1xf32> to vector<4x4xf32>
    %21 = arith.addf %18, %20 : vector<4x4xf32>
    %cst_14 = arith.constant 0.000000e+00 : f32
    %22 = vector.broadcast %cst_14 : f32 to vector<4x4xf32>
    %23 = arith.maximumf %21, %22 : vector<4x4xf32>
    %c0_15 = arith.constant 0 : index
    %c0_16 = arith.constant 0 : index
    %24 = vector.load %arg4[%c0_15, %c0_16] : memref<16x4xf32, #tpu.memory_space<vmem>>, vector<16x4xf32>
    %cst_17 = arith.constant dense<0.000000e+00> : vector<16x4xf32>
    %25 = tpu.matmul %24, %23, %cst_17 {dimension_numbers = #tpu.dot_dimension_numbers<[1], [0], [0], [1], [0, 0, 1, 1], [], []>, precision = #tpu.contract_precision<fp32>} : vector<16x4xf32>, vector<4x4xf32>, vector<16x4xf32> -> vector<16x4xf32>
    %c0_18 = arith.constant 0 : index
    %c0_19 = arith.constant 0 : index
    %26 = vector.load %arg5[%c0_18, %c0_19] : memref<16x1xf32, #tpu.memory_space<vmem>>, vector<16x1xf32>
    %27 = vector.broadcast %26 : vector<16x1xf32> to vector<16x4xf32>
    %28 = arith.addf %25, %27 : vector<16x4xf32>
    %29 = vector.extract_strided_slice %28 {offsets = [0, 0], sizes = [16, 2], strides = [1, 1]} : vector<16x4xf32> to vector<16x2xf32>
    %30 = vector.extract_strided_slice %28 {offsets = [0, 2], sizes = [16, 2], strides = [1, 1]} : vector<16x4xf32> to vector<16x2xf32>
    %31 = arith.addf %29, %30 : vector<16x2xf32>
    %cst_20 = arith.constant 5.000000e-01 : f32
    %32 = vector.broadcast %cst_20 : f32 to vector<16x2xf32>
    %33 = arith.mulf %32, %31 : vector<16x2xf32>
    %34 = math.tanh %33 : vector<16x2xf32>
    %cst_21 = arith.constant 1.000000e+00 : f32
    %35 = vector.broadcast %cst_21 : f32 to vector<16x2xf32>
    %36 = arith.addf %34, %35 : vector<16x2xf32>
    %cst_22 = arith.constant 5.000000e-01 : f32
    %37 = vector.broadcast %cst_22 : f32 to vector<16x2xf32>
    %38 = arith.mulf %37, %36 : vector<16x2xf32>
    %c0_23 = arith.constant 0 : index
    %c0_24 = arith.constant 0 : index
    %c0_25 = arith.constant 0 : index
    %39 = vector.load %arg1[%c0_23, %c0_24, %c0_25] : memref<2x16x256xf32, #tpu.memory_space<vmem>>, vector<1x16x256xf32>
    %40 = vector.shape_cast %39 : vector<1x16x256xf32> to vector<16x256xf32>
    %41 = vector.extract_strided_slice %38 {offsets = [0, 0], sizes = [16, 1], strides = [1, 1]} : vector<16x2xf32> to vector<16x1xf32>
    %42 = vector.broadcast %41 : vector<16x1xf32> to vector<16x256xf32>
    %43 = arith.mulf %40, %42 : vector<16x256xf32>
    %c0_26 = arith.constant 0 : index
    %c0_27 = arith.constant 0 : index
    %c0_28 = arith.constant 0 : index
    %44 = vector.load %arg9[%c0_26, %c0_27, %c0_28] : memref<2x16x256xf32, #tpu.memory_space<vmem>>, vector<1x16x256xf32>
    %45 = vector.shape_cast %44 : vector<1x16x256xf32> to vector<16x256xf32>
    %46 = vector.shape_cast %43 : vector<16x256xf32> to vector<1x16x256xf32>
    tpu.vector_store %arg9[%c0_26, %c0_27, %c0_28], %46 {strides = array<i32>} : memref<2x16x256xf32, #tpu.memory_space<vmem>>, vector<1x16x256xf32>,
    %cst_29 = arith.constant dense<0.000000e+00> : vector<256xf32>
    %47 = vector.multi_reduction <add>, %43, %cst_29 [0] : vector<16x256xf32> to vector<256xf32>
    %48 = vector.shape_cast %47 : vector<256xf32> to vector<1x256xf32>
    %cst_30 = arith.constant 1.600000e+01 : f32
    %49 = vector.broadcast %cst_30 : f32 to vector<1x256xf32>
    %50 = arith.divf %48, %49 : vector<1x256xf32>
    %cst_31 = arith.constant dense<0xFF800000> : vector<256xf32>
    %51 = vector.multi_reduction <maximumf>, %43, %cst_31 [0] : vector<16x256xf32> to vector<256xf32>
    %52 = vector.shape_cast %51 : vector<256xf32> to vector<1x256xf32>
    %c1_32 = arith.constant 1 : index
    %c0_33 = arith.constant 0 : index
    %c0_34 = arith.constant 0 : index
    %53 = vector.load %arg1[%c1_32, %c0_33, %c0_34] : memref<2x16x256xf32, #tpu.memory_space<vmem>>, vector<1x16x256xf32>
    %54 = vector.shape_cast %53 : vector<1x16x256xf32> to vector<16x256xf32>
    %55 = vector.extract_strided_slice %38 {offsets = [0, 1], sizes = [16, 1], strides = [1, 1]} : vector<16x2xf32> to vector<16x1xf32>
    %56 = vector.broadcast %55 : vector<16x1xf32> to vector<16x256xf32>
    %57 = arith.mulf %54, %56 : vector<16x256xf32>
    %c1_35 = arith.constant 1 : index
    %c0_36 = arith.constant 0 : index
    %c0_37 = arith.constant 0 : index
    %58 = vector.load %arg9[%c1_35, %c0_36, %c0_37] : memref<2x16x256xf32, #tpu.memory_space<vmem>>, vector<1x16x256xf32>
    %59 = vector.shape_cast %58 : vector<1x16x256xf32> to vector<16x256xf32>
    %60 = vector.shape_cast %57 : vector<16x256xf32> to vector<1x16x256xf32>
    tpu.vector_store %arg9[%c1_35, %c0_36, %c0_37], %60 {strides = array<i32>} : memref<2x16x256xf32, #tpu.memory_space<vmem>>, vector<1x16x256xf32>,
    %cst_38 = arith.constant dense<0.000000e+00> : vector<256xf32>
    %61 = vector.multi_reduction <add>, %57, %cst_38 [0] : vector<16x256xf32> to vector<256xf32>
    %62 = vector.shape_cast %61 : vector<256xf32> to vector<1x256xf32>
    %cst_39 = arith.constant 1.600000e+01 : f32
    %63 = vector.broadcast %cst_39 : f32 to vector<1x256xf32>
    %64 = arith.divf %62, %63 : vector<1x256xf32>
    %cst_40 = arith.constant dense<0xFF800000> : vector<256xf32>
    %65 = vector.multi_reduction <maximumf>, %57, %cst_40 [0] : vector<16x256xf32> to vector<256xf32>
    %66 = vector.shape_cast %65 : vector<256xf32> to vector<1x256xf32>
    %67 = tpu.concatenate %50, %64, %52, %66 in 0 : vector<1x256xf32>, vector<1x256xf32>, vector<1x256xf32>, vector<1x256xf32> -> vector<4x256xf32>
    %68 = tpu.iota {dimensions = array<i32: 0>} : vector<4x1xi32>
    %c2_i32 = arith.constant 2 : i32
    %69 = vector.broadcast %c2_i32 : i32 to vector<4x1xi32>
    %70 = arith.cmpi slt, %68, %69 : vector<4x1xi32>
    %cst_41 = arith.constant 0.000000e+00 : f32
    %71 = vector.broadcast %cst_41 : f32 to vector<4x256xf32>
    %cst_42 = arith.constant 0.000000e+00 : f32
    %72 = vector.broadcast %cst_42 : f32 to vector<4x256xf32>
    %c17_i32 = arith.constant 17 : i32
    %73 = tpu.dynamic_rotate %67 by %c17_i32 dim 1 : vector<4x256xf32>, i32 -> vector<4x256xf32>
    %c0_43 = arith.constant 0 : index
    %c0_44 = arith.constant 0 : index
    %74 = vector.load %arg6[%c0_43, %c0_44] : memref<9x256xf32, #tpu.memory_space<vmem>>, vector<1x256xf32>
    %c0_45 = arith.constant 0 : index
    %c0_46 = arith.constant 0 : index
    %75 = vector.load %arg7[%c0_45, %c0_46] : memref<9x256xf32, #tpu.memory_space<vmem>>, vector<1x256xf32>
    %76 = vector.shape_cast %70 : vector<4x1xi1> to vector<4x1xi1>
    %77 = vector.broadcast %76 : vector<4x1xi1> to vector<4x256xi1>
    %78 = vector.shape_cast %74 : vector<1x256xf32> to vector<1x256xf32>
    %79 = vector.broadcast %78 : vector<1x256xf32> to vector<4x256xf32>
    %80 = vector.shape_cast %75 : vector<1x256xf32> to vector<1x256xf32>
    %81 = vector.broadcast %80 : vector<1x256xf32> to vector<4x256xf32>
    %82 = arith.select %77, %79, %81 : vector<4x256xi1>, vector<4x256xf32>
    %83 = arith.mulf %73, %82 : vector<4x256xf32>
    %84 = arith.addf %71, %83 : vector<4x256xf32>
    %c16_i32 = arith.constant 16 : i32
    %85 = tpu.dynamic_rotate %67 by %c16_i32 dim 1 : vector<4x256xf32>, i32 -> vector<4x256xf32>
    %c1_47 = arith.constant 1 : index
    %c0_48 = arith.constant 0 : index
    %86 = vector.load %arg6[%c1_47, %c0_48] : memref<9x256xf32, #tpu.memory_space<vmem>>, vector<1x256xf32>
    %c1_49 = arith.constant 1 : index
    %c0_50 = arith.constant 0 : index
    %87 = vector.load %arg7[%c1_49, %c0_50] : memref<9x256xf32, #tpu.memory_space<vmem>>, vector<1x256xf32>
    %88 = vector.shape_cast %70 : vector<4x1xi1> to vector<4x1xi1>
    %89 = vector.broadcast %88 : vector<4x1xi1> to vector<4x256xi1>
    %90 = vector.shape_cast %86 : vector<1x256xf32> to vector<1x256xf32>
    %91 = vector.broadcast %90 : vector<1x256xf32> to vector<4x256xf32>
    %92 = vector.shape_cast %87 : vector<1x256xf32> to vector<1x256xf32>
    %93 = vector.broadcast %92 : vector<1x256xf32> to vector<4x256xf32>
    %94 = arith.select %89, %91, %93 : vector<4x256xi1>, vector<4x256xf32>
    %95 = arith.mulf %85, %94 : vector<4x256xf32>
    %96 = arith.addf %72, %95 : vector<4x256xf32>
    %c15_i32 = arith.constant 15 : i32
    %97 = tpu.dynamic_rotate %67 by %c15_i32 dim 1 : vector<4x256xf32>, i32 -> vector<4x256xf32>
    %c2 = arith.constant 2 : index
    %c0_51 = arith.constant 0 : index
    %98 = vector.load %arg6[%c2, %c0_51] : memref<9x256xf32, #tpu.memory_space<vmem>>, vector<1x256xf32>
    %c2_52 = arith.constant 2 : index
    %c0_53 = arith.constant 0 : index
    %99 = vector.load %arg7[%c2_52, %c0_53] : memref<9x256xf32, #tpu.memory_space<vmem>>, vector<1x256xf32>
    %100 = vector.shape_cast %70 : vector<4x1xi1> to vector<4x1xi1>
    %101 = vector.broadcast %100 : vector<4x1xi1> to vector<4x256xi1>
    %102 = vector.shape_cast %98 : vector<1x256xf32> to vector<1x256xf32>
    %103 = vector.broadcast %102 : vector<1x256xf32> to vector<4x256xf32>
    %104 = vector.shape_cast %99 : vector<1x256xf32> to vector<1x256xf32>
    %105 = vector.broadcast %104 : vector<1x256xf32> to vector<4x256xf32>
    %106 = arith.select %101, %103, %105 : vector<4x256xi1>, vector<4x256xf32>
    %107 = arith.mulf %97, %106 : vector<4x256xf32>
    %108 = arith.addf %84, %107 : vector<4x256xf32>
    %c1_i32 = arith.constant 1 : i32
    %109 = tpu.dynamic_rotate %67 by %c1_i32 dim 1 : vector<4x256xf32>, i32 -> vector<4x256xf32>
    %c3 = arith.constant 3 : index
    %c0_54 = arith.constant 0 : index
    %110 = vector.load %arg6[%c3, %c0_54] : memref<9x256xf32, #tpu.memory_space<vmem>>, vector<1x256xf32>
    %c3_55 = arith.constant 3 : index
    %c0_56 = arith.constant 0 : index
    %111 = vector.load %arg7[%c3_55, %c0_56] : memref<9x256xf32, #tpu.memory_space<vmem>>, vector<1x256xf32>
    %112 = vector.shape_cast %70 : vector<4x1xi1> to vector<4x1xi1>
    %113 = vector.broadcast %112 : vector<4x1xi1> to vector<4x256xi1>
    %114 = vector.shape_cast %110 : vector<1x256xf32> to vector<1x256xf32>
    %115 = vector.broadcast %114 : vector<1x256xf32> to vector<4x256xf32>
    %116 = vector.shape_cast %111 : vector<1x256xf32> to vector<1x256xf32>
    %117 = vector.broadcast %116 : vector<1x256xf32> to vector<4x256xf32>
    %118 = arith.select %113, %115, %117 : vector<4x256xi1>, vector<4x256xf32>
    %119 = arith.mulf %109, %118 : vector<4x256xf32>
    %120 = arith.addf %96, %119 : vector<4x256xf32>
    %c4 = arith.constant 4 : index
    %c0_57 = arith.constant 0 : index
    %121 = vector.load %arg6[%c4, %c0_57] : memref<9x256xf32, #tpu.memory_space<vmem>>, vector<1x256xf32>
    %c4_58 = arith.constant 4 : index
    %c0_59 = arith.constant 0 : index
    %122 = vector.load %arg7[%c4_58, %c0_59] : memref<9x256xf32, #tpu.memory_space<vmem>>, vector<1x256xf32>
    %123 = vector.shape_cast %70 : vector<4x1xi1> to vector<4x1xi1>
    %124 = vector.broadcast %123 : vector<4x1xi1> to vector<4x256xi1>
    %125 = vector.shape_cast %121 : vector<1x256xf32> to vector<1x256xf32>
    %126 = vector.broadcast %125 : vector<1x256xf32> to vector<4x256xf32>
    %127 = vector.shape_cast %122 : vector<1x256xf32> to vector<1x256xf32>
    %128 = vector.broadcast %127 : vector<1x256xf32> to vector<4x256xf32>
    %129 = arith.select %124, %126, %128 : vector<4x256xi1>, vector<4x256xf32>
    %130 = arith.mulf %67, %129 : vector<4x256xf32>
    %131 = arith.addf %108, %130 : vector<4x256xf32>
    %c255_i32 = arith.constant 255 : i32
    %132 = tpu.dynamic_rotate %67 by %c255_i32 dim 1 : vector<4x256xf32>, i32 -> vector<4x256xf32>
    %c5 = arith.constant 5 : index
    %c0_60 = arith.constant 0 : index
    %133 = vector.load %arg6[%c5, %c0_60] : memref<9x256xf32, #tpu.memory_space<vmem>>, vector<1x256xf32>
    %c5_61 = arith.constant 5 : index
    %c0_62 = arith.constant 0 : index
    %134 = vector.load %arg7[%c5_61, %c0_62] : memref<9x256xf32, #tpu.memory_space<vmem>>, vector<1x256xf32>
    %135 = vector.shape_cast %70 : vector<4x1xi1> to vector<4x1xi1>
    %136 = vector.broadcast %135 : vector<4x1xi1> to vector<4x256xi1>
    %137 = vector.shape_cast %133 : vector<1x256xf32> to vector<1x256xf32>
    %138 = vector.broadcast %137 : vector<1x256xf32> to vector<4x256xf32>
    %139 = vector.shape_cast %134 : vector<1x256xf32> to vector<1x256xf32>
    %140 = vector.broadcast %139 : vector<1x256xf32> to vector<4x256xf32>
    %141 = arith.select %136, %138, %140 : vector<4x256xi1>, vector<4x256xf32>
    %142 = arith.mulf %132, %141 : vector<4x256xf32>
    %143 = arith.addf %120, %142 : vector<4x256xf32>
    %c241_i32 = arith.constant 241 : i32
    %144 = tpu.dynamic_rotate %67 by %c241_i32 dim 1 : vector<4x256xf32>, i32 -> vector<4x256xf32>
    %c6 = arith.constant 6 : index
    %c0_63 = arith.constant 0 : index
    %145 = vector.load %arg6[%c6, %c0_63] : memref<9x256xf32, #tpu.memory_space<vmem>>, vector<1x256xf32>
    %c6_64 = arith.constant 6 : index
    %c0_65 = arith.constant 0 : index
    %146 = vector.load %arg7[%c6_64, %c0_65] : memref<9x256xf32, #tpu.memory_space<vmem>>, vector<1x256xf32>
    %147 = vector.shape_cast %70 : vector<4x1xi1> to vector<4x1xi1>
    %148 = vector.broadcast %147 : vector<4x1xi1> to vector<4x256xi1>
    %149 = vector.shape_cast %145 : vector<1x256xf32> to vector<1x256xf32>
    %150 = vector.broadcast %149 : vector<1x256xf32> to vector<4x256xf32>
    %151 = vector.shape_cast %146 : vector<1x256xf32> to vector<1x256xf32>
    %152 = vector.broadcast %151 : vector<1x256xf32> to vector<4x256xf32>
    %153 = arith.select %148, %150, %152 : vector<4x256xi1>, vector<4x256xf32>
    %154 = arith.mulf %144, %153 : vector<4x256xf32>
    %155 = arith.addf %131, %154 : vector<4x256xf32>
    %c240_i32 = arith.constant 240 : i32
    %156 = tpu.dynamic_rotate %67 by %c240_i32 dim 1 : vector<4x256xf32>, i32 -> vector<4x256xf32>
    %c7 = arith.constant 7 : index
    %c0_66 = arith.constant 0 : index
    %157 = vector.load %arg6[%c7, %c0_66] : memref<9x256xf32, #tpu.memory_space<vmem>>, vector<1x256xf32>
    %c7_67 = arith.constant 7 : index
    %c0_68 = arith.constant 0 : index
    %158 = vector.load %arg7[%c7_67, %c0_68] : memref<9x256xf32, #tpu.memory_space<vmem>>, vector<1x256xf32>
    %159 = vector.shape_cast %70 : vector<4x1xi1> to vector<4x1xi1>
    %160 = vector.broadcast %159 : vector<4x1xi1> to vector<4x256xi1>
    %161 = vector.shape_cast %157 : vector<1x256xf32> to vector<1x256xf32>
    %162 = vector.broadcast %161 : vector<1x256xf32> to vector<4x256xf32>
    %163 = vector.shape_cast %158 : vector<1x256xf32> to vector<1x256xf32>
    %164 = vector.broadcast %163 : vector<1x256xf32> to vector<4x256xf32>
    %165 = arith.select %160, %162, %164 : vector<4x256xi1>, vector<4x256xf32>
    %166 = arith.mulf %156, %165 : vector<4x256xf32>
    %167 = arith.addf %143, %166 : vector<4x256xf32>
    %c239_i32 = arith.constant 239 : i32
    %168 = tpu.dynamic_rotate %67 by %c239_i32 dim 1 : vector<4x256xf32>, i32 -> vector<4x256xf32>
    %c8 = arith.constant 8 : index
    %c0_69 = arith.constant 0 : index
    %169 = vector.load %arg6[%c8, %c0_69] : memref<9x256xf32, #tpu.memory_space<vmem>>, vector<1x256xf32>
    %c8_70 = arith.constant 8 : index
    %c0_71 = arith.constant 0 : index
    %170 = vector.load %arg7[%c8_70, %c0_71] : memref<9x256xf32, #tpu.memory_space<vmem>>, vector<1x256xf32>
    %171 = vector.shape_cast %70 : vector<4x1xi1> to vector<4x1xi1>
    %172 = vector.broadcast %171 : vector<4x1xi1> to vector<4x256xi1>
    %173 = vector.shape_cast %169 : vector<1x256xf32> to vector<1x256xf32>
    %174 = vector.broadcast %173 : vector<1x256xf32> to vector<4x256xf32>
    %175 = vector.shape_cast %170 : vector<1x256xf32> to vector<1x256xf32>
    %176 = vector.broadcast %175 : vector<1x256xf32> to vector<4x256xf32>
    %177 = arith.select %172, %174, %176 : vector<4x256xi1>, vector<4x256xf32>
    %178 = arith.mulf %168, %177 : vector<4x256xf32>
    %179 = arith.addf %155, %178 : vector<4x256xf32>
    %180 = arith.addf %179, %167 : vector<4x256xf32>
    %181 = vector.extract_strided_slice %180 {offsets = [0, 0], sizes = [2, 256], strides = [1, 1]} : vector<4x256xf32> to vector<2x256xf32>
    %182 = vector.extract_strided_slice %180 {offsets = [2, 0], sizes = [2, 256], strides = [1, 1]} : vector<4x256xf32> to vector<2x256xf32>
    %183 = arith.addf %181, %182 : vector<2x256xf32>
    %c0_72 = arith.constant 0 : index
    %184 = memref.load %arg8[%c0_72] : memref<1xf32, #tpu.memory_space<smem>>
    %185 = vector.broadcast %184 : f32 to vector<2x256xf32>
    %186 = arith.addf %183, %185 : vector<2x256xf32>
    %cst_73 = arith.constant 5.000000e-01 : f32
    %187 = vector.broadcast %cst_73 : f32 to vector<2x256xf32>
    %188 = arith.mulf %187, %186 : vector<2x256xf32>
    %189 = math.tanh %188 : vector<2x256xf32>
    %cst_74 = arith.constant 1.000000e+00 : f32
    %190 = vector.broadcast %cst_74 : f32 to vector<2x256xf32>
    %191 = arith.addf %189, %190 : vector<2x256xf32>
    %cst_75 = arith.constant 5.000000e-01 : f32
    %192 = vector.broadcast %cst_75 : f32 to vector<2x256xf32>
    %193 = arith.mulf %192, %191 : vector<2x256xf32>
    %c0_76 = arith.constant 0 : index
    %c0_77 = arith.constant 0 : index
    %c0_78 = arith.constant 0 : index
    %194 = vector.load %arg9[%c0_76, %c0_77, %c0_78] : memref<2x16x256xf32, #tpu.memory_space<vmem>>, vector<1x16x256xf32>
    %195 = vector.shape_cast %194 : vector<1x16x256xf32> to vector<16x256xf32>
    %196 = vector.extract_strided_slice %193 {offsets = [0, 0], sizes = [1, 256], strides = [1, 1]} : vector<2x256xf32> to vector<1x256xf32>
    %197 = vector.broadcast %196 : vector<1x256xf32> to vector<16x256xf32>
    %198 = arith.mulf %195, %197 : vector<16x256xf32>
    %c0_79 = arith.constant 0 : index
    %c0_80 = arith.constant 0 : index
    %c0_81 = arith.constant 0 : index
    %199 = vector.load %arg9[%c0_79, %c0_80, %c0_81] : memref<2x16x256xf32, #tpu.memory_space<vmem>>, vector<1x16x256xf32>
    %200 = vector.shape_cast %199 : vector<1x16x256xf32> to vector<16x256xf32>
    %201 = vector.shape_cast %198 : vector<16x256xf32> to vector<1x16x256xf32>
    tpu.vector_store %arg9[%c0_79, %c0_80, %c0_81], %201 {strides = array<i32>} : memref<2x16x256xf32, #tpu.memory_space<vmem>>, vector<1x16x256xf32>,
    %c1_82 = arith.constant 1 : index
    %c0_83 = arith.constant 0 : index
    %c0_84 = arith.constant 0 : index
    %202 = vector.load %arg9[%c1_82, %c0_83, %c0_84] : memref<2x16x256xf32, #tpu.memory_space<vmem>>, vector<1x16x256xf32>
    %203 = vector.shape_cast %202 : vector<1x16x256xf32> to vector<16x256xf32>
    %204 = vector.extract_strided_slice %193 {offsets = [1, 0], sizes = [1, 256], strides = [1, 1]} : vector<2x256xf32> to vector<1x256xf32>
    %205 = vector.broadcast %204 : vector<1x256xf32> to vector<16x256xf32>
    %206 = arith.mulf %203, %205 : vector<16x256xf32>
    %c1_85 = arith.constant 1 : index
    %c0_86 = arith.constant 0 : index
    %c0_87 = arith.constant 0 : index
    %207 = vector.load %arg9[%c1_85, %c0_86, %c0_87] : memref<2x16x256xf32, #tpu.memory_space<vmem>>, vector<1x16x256xf32>
    %208 = vector.shape_cast %207 : vector<1x16x256xf32> to vector<16x256xf32>
    %209 = vector.shape_cast %206 : vector<16x256xf32> to vector<1x16x256xf32>
    tpu.vector_store %arg9[%c1_85, %c0_86, %c0_87], %209 {strides = array<i32>} : memref<2x16x256xf32, #tpu.memory_space<vmem>>, vector<1x16x256xf32>,
    return
  }
  func.func @transform_0(%arg0: i32) -> (i32, i32, i32) {
    %c0_i32 = arith.constant 0 : i32
    %c0_i32_0 = arith.constant 0 : i32
    %c0_i32_1 = arith.constant 0 : i32
    return %arg0, %c0_i32, %c0_i32_0 : i32, i32, i32
  }
  func.func @transform_1(%arg0: i32) -> (i32, i32) {
    %c0_i32 = arith.constant 0 : i32
    %c0_i32_0 = arith.constant 0 : i32
    %c0_i32_1 = arith.constant 0 : i32
    return %c0_i32, %c0_i32_0 : i32, i32
  }
  func.func @transform_2(%arg0: i32) -> (i32, i32) {
    %c0_i32 = arith.constant 0 : i32
    %c0_i32_0 = arith.constant 0 : i32
    %c0_i32_1 = arith.constant 0 : i32
    return %c0_i32, %c0_i32_0 : i32, i32
  }
  func.func @transform_3(%arg0: i32) -> (i32, i32) {
    %c0_i32 = arith.constant 0 : i32
    %c0_i32_0 = arith.constant 0 : i32
    %c0_i32_1 = arith.constant 0 : i32
    return %c0_i32, %c0_i32_0 : i32, i32
  }
  func.func @transform_4(%arg0: i32) -> (i32, i32) {
    %c0_i32 = arith.constant 0 : i32
    %c0_i32_0 = arith.constant 0 : i32
    %c0_i32_1 = arith.constant 0 : i32
    return %c0_i32, %c0_i32_0 : i32, i32
  }
  func.func @transform_5(%arg0: i32) -> (i32, i32) {
    %c0_i32 = arith.constant 0 : i32
    %c0_i32_0 = arith.constant 0 : i32
    %c0_i32_1 = arith.constant 0 : i32
    return %c0_i32, %c0_i32_0 : i32, i32
  }
  func.func @transform_6(%arg0: i32) -> (i32, i32) {
    %c0_i32 = arith.constant 0 : i32
    %c0_i32_0 = arith.constant 0 : i32
    %c0_i32_1 = arith.constant 0 : i32
    return %c0_i32, %c0_i32_0 : i32, i32
  }
  func.func @transform_7(%arg0: i32) -> i32 {
    %c0_i32 = arith.constant 0 : i32
    %c0_i32_0 = arith.constant 0 : i32
    return %c0_i32 : i32
  }
  func.func @transform_8(%arg0: i32) -> (i32, i32, i32) {
    %c0_i32 = arith.constant 0 : i32
    %c0_i32_0 = arith.constant 0 : i32
    %c0_i32_1 = arith.constant 0 : i32
    return %arg0, %c0_i32, %c0_i32_0 : i32, i32, i32
  }
}

</mosaic_0001>

<bundles_post_ra>
// kernel: cbam_forward.1
= control target key start
LH: loop header
LB: loop body
LE: loop exit
PB: predicated region body
PF: predicated region fallthrough
CT: control target
= control target key end

     0   :  { %v1815_v16 = vmov 0.0|0.0   ;;  %vm1816_vm0 = vmmov 0   ;;  %v1817_v17 = vmov 0.0   ;;  %v1818_v18 = vmov 0   ;;  %s1822_s30 = smov 15   ;;  %s1823_s9 = smov 16   ;;  %s2272_s0 = inlined_call_operand.vmem [shape: f32[2,16,256], index: 0, kind: input, shape index: {}]   ;;  %s2273_s2 = inlined_call_operand.vmem [shape: f32[4,1], index: 2, kind: input, shape index: {}]   ;;  %s2274_s1 = inlined_call_operand.vmem [shape: f32[4,16], index: 1, kind: input, shape index: {}]   ;;  %s2275_s3 = inlined_call_operand.vmem [shape: f32[16,4], index: 3, kind: input, shape index: {}]   ;;  %s2276_s4 = inlined_call_operand.vmem [shape: f32[16,1], index: 4, kind: input, shape index: {}]   ;;  %s2277_s5 = inlined_call_operand.vmem [shape: f32[9,256], index: 5, kind: input, shape index: {}]   ;;  %s2278_s6 = inlined_call_operand.vmem [shape: f32[9,256], index: 6, kind: input, shape index: {}]   ;;  %s2279_s7 = inlined_call_operand.<no memory space> [shape: f32[1], index: 7, kind: input, shape index: {}]   ;;  %s2280_s8 = inlined_call_operand.vmem [shape: f32[2,16,256], index: 8, kind: output, shape index: {}]  }
   0x1   :  { %v1877_v0 = vld [vmem:[%s2272_s0 + $0x20] sm:$0xff]  ;;  %v1882_v1 = vld [vmem:[%s2272_s0 + $0x28] sm:$0xff]  ;;  %v1899_v5 = vld [vmem:[%s2272_s0 + $0x30] sm:$0xff]  ;;  %1748 = vmatprep.subr.bf16.mxu0 %v1815_v16  ;;  %1680 = vmatprep.mubr.msk.f32.mxu0 %vm1816_vm0, %v1817_v17  ;;  %vm84_vm1 = vcmask 130048   ;;  %vm68_vm2 = vcmask 7168   ;;  %vm71_vm3 = vcmask 15360  }
   0x2   :  { %v1887_v2 = vld [vmem:[%s2272_s0] sm:$0xff]  ;;  %v54_v3 = vadd.f32 %v1882_v1, %v1877_v0  ;;  %v1894_v4 = vld [vmem:[%s2272_s0 + $0x8] sm:$0xff]  ;;  %v1904_v6 = vld [vmem:[%s2272_s0 + $0x38] sm:$0xff]  ;;  %v62_v15 = vmax.f32 %v1877_v0, %v1882_v1  ;;  %1803 = vset.pattern.permute.xlu0 %v1818_v18  ;;  %1804 = vset.pattern.permute.xlu1 %v1818_v18  ;;  %vm74_vm4 = vcmask 23552   ;;  %vm562_vm5 = vcmask 31744   ;;  %s1824_s10 = smov 1  }
   0x3   :  { %v34_v7 = vadd.f32 %v1894_v4, %v1887_v2  ;;  %v1911_v8 = vld [vmem:[%s2272_s0 + $0x10] sm:$0xff]  ;;  %v1916_v9 = vld [vmem:[%s2272_s0 + $0x18] sm:$0xff]  ;;  %v57_v10 = vadd.f32 %v1904_v6, %v1899_v5  ;;  %v43_v13 = vmax.f32 %v1887_v2, %v1894_v4  ;;  %v65_v14 = vmax.f32 %v1899_v5, %v1904_v6  ;;  %v78_v19 = vld [vmem:[%s2273_s2] sm:$0xf]  ;;  %s1825_s11 = smov 127   ;;  %s1826_s12 = smov 113  }
   0x4   :  { %55 = vadd.xlane.f32.xlu1 %v54_v3  ;;  %v37_v11 = vadd.f32 %v1916_v9, %v1911_v8  ;;  %v46_v12 = vmax.f32 %v1911_v8, %v1916_v9  ;;  %v77_v20 = vld [vmem:[%s2274_s1] sm:$0xf]  ;;  %v549_v60 = vld [vmem:[%s2275_s3 + $0x8] sm:$0xff]  ;;  %vm569_vm6 = vcmask 1043456   ;;  %vm1180_vm7 = vcmask 1040384   ;;  %s1827_s13 = smov 112  }
   0x5   :  { %35 = vadd.xlane.f32.xlu0 %v34_v7  ;;  %v86_v21 = vsel %vm84_vm1, %v77_v20, 0  ;;  %v548_v59 = vld [vmem:[%s2275_s3] sm:$0xff]  ;;  %v567_v62 = vsel %vm562_vm5, %v549_v60, 0  ;;  %s1819_s3 = smov 126   ;;  %vm1183_vm8 = vcmask 1041408   ;;  %vm1186_vm9 = vcmask 1042432  }
   0x6   :  { %v155_v24 = vand.u32 4294901760, %v86_v21  ;;  %v564_v61 = vsel %vm562_vm5, %v548_v59, 0  ;;  %s1828_s14 = smov 111  }
   0x7   :  { %v639_v63 = vand.u32 4294901760, %v564_v61 }
   0x8   :  { %58 = vadd.xlane.f32.xlu1 %v57_v10  ;;  %v156_v29 = vsub.f32 %v86_v21, %v155_v24 }
   0x9   :  { %38 = vadd.xlane.f32.xlu0 %v37_v11  ;;  %v640_v3 = vsub.f32 %v564_v61, %v639_v63 }
   0xa   :  { %v157_v35 = vand.u32 4294901760, %v156_v29 }
   0xb   :  { %v641_v7 = vand.u32 4294901760, %v640_v3 }
   0xc   :  { %47 = vmax.xlane.f32.xlu1 %v46_v12  ;;  %v158_v44 = vsub.f32 %v156_v29, %v157_v35  ;;  %v550_v12 = vld [vmem:[%s2276_s4] sm:$0xff] }
   0xd   :  { %44 = vmax.xlane.f32.xlu0 %v43_v13  ;;  %v642_v10 = vsub.f32 %v640_v3, %v641_v7  ;;  %v551_v13 = vld [vmem:[%s2276_s4 + $0x8] sm:$0xff]  ;;  %s1821_s4 = smov 17  }
   0xe   :  { %v159_v50 = vand.u32 4294901760, %v158_v44 }
   0xf   :  { %v643_v11 = vand.u32 4294901760, %v642_v10 }
  0x10   :  { %66 = vmax.xlane.f32.xlu1 %v65_v14  ;;  %v649_v14 = vand.u32 4294901760, %v567_v62 }
  0x11   :  { %63 = vmax.xlane.f32.xlu0 %v62_v15  ;;  %1720 = vmatprep.mubr.f32.mxu1 %v643_v11 }
  0x12   :  { %v650_v15 = vsub.f32 %v567_v62, %v649_v14 }
  0x21   :  { %554 = vperm.xlu1 %1804, %v550_v12  }
  0x25   :  { %559 = vperm.xlu1 %1804, %v551_v13  }
  0x27   :  { %81 = vperm.xlu0 %1803, %v78_v19  }
  0x91   :  { %v56_v22 = vpop.xlane.xlu1 %55 }
  0x92   :  { %v36_v23 = vpop.xlane.xlu0 %35  ;;  %v60_v30 = vmul.f32 0.00390625, %v56_v22 }
  0x93   :  { %v41_v31 = vmul.f32 0.00390625, %v36_v23 }
  0x95   :  { %v59_v25 = vpop.xlane.xlu1 %58  ;;  %v69_v37 = vsel %vm68_vm2, %v41_v31, %v60_v30 }
  0x96   :  { %v61_v26 = vmul.f32 0.00390625, %v59_v25  ;;  %v39_v27 = vpop.xlane.xlu0 %38 }
  0x97   :  { %v42_v28 = vmul.f32 0.00390625, %v39_v27 }
  0x99   :  { %v48_v32 = vpop.xlane.xlu1 %47  ;;  %v70_v33 = vsel %vm68_vm2, %v42_v28, %v61_v26 }
  0x9a   :  { %v45_v34 = vpop.xlane.xlu0 %44  ;;  %v73_v36 = vsel %vm71_vm3, %v70_v33, %v48_v32 }
  0x9b   :  { %v72_v39 = vsel %vm71_vm3, %v69_v37, %v45_v34 }
  0x9d   :  { %v67_v38 = vpop.xlane.xlu1 %66 }
  0x9e   :  { %v76_v40 = vsel %vm74_vm4, %v73_v36, %v67_v38  ;;  %v64_v41 = vpop.xlane.xlu0 %63  ;;  %v1820_v36 = vmov 1  }
  0x9f   :  { %v92_v42 = vand.u32 4294901760, %v76_v40  ;;  %v75_v43 = vsel %vm74_vm4, %v72_v39, %v64_v41  ;;  %1806 = vset.pattern.permute.xlu0 %v1820_v36 }
  0xa0   :  { %v89_v45 = vand.u32 4294901760, %v75_v43 }
  0xa1   :  { %v174_v46 = vsub.f32 %v76_v40, %v92_v42  ;;  %v555_v30 = vpop.permute.xlu1 %554 }
  0xa2   :  { %v167_v47 = vsub.f32 %v75_v43, %v89_v45  ;;  %v1749_v48 = vpack.c.bf16 %v92_v42, %v89_v45 }
  0xa3   :  { %v175_v49 = vand.u32 4294901760, %v174_v46 }
  0xa4   :  { %v168_v51 = vand.u32 4294901760, %v167_v47  ;;  %1750 = vmatpush3.bf16.msra.mxu0 %v1749_v48  ;;  %v1755_v57 = vpack.c.bf16 %v174_v46, %v167_v47 }
  0xa5   :  { %v176_v52 = vsub.f32 %v174_v46, %v175_v49  ;;  %1751 = vmatprep.subr.bf16.mxu0 %v1815_v16  ;;  %v560_v34 = vpop.permute.xlu1 %559 }
  0xa6   :  { %v169_v53 = vsub.f32 %v167_v47, %v168_v51  ;;  %v1761_v58 = vpack.c.bf16 %v175_v49, %v168_v51 }
  0xa7   :  { %v177_v54 = vand.u32 4294901760, %v176_v52  ;;  %1681 = vmatmul.mubr.f32.vlgmr.msra.gmra.mrb[0].mxu0 %v159_v50 }
  0xa8   :  { %v170_v55 = vand.u32 4294901760, %v169_v53  ;;  %1687 = vmatprep.mubr.msk.f32.mxu0 %vm1816_vm0, %v1817_v17 }
  0xaa   :  { %v1752_v56 = vpack.c.bf16 %v177_v54, %v170_v55 }
  0xac   :  { %1753 = vmatpush3.bf16.msra.mxu0 %v1752_v56 }
  0xad   :  { %1754 = vmatprep.subr.bf16.mxu0 %v1815_v16 }
  0xaf   :  { %1688 = vmatmul.mubr.f32.vlgmr.msra.gmra.mrb[0].mxu0 %v155_v24 }
  0xb0   :  { %1756 = vmatpush3.bf16.msra.mxu0 %v1755_v57  ;;  %1694 = vmatprep.mubr.msk.f32.mxu0 %vm1816_vm0, %v1817_v17 }
  0xb1   :  { %1757 = vmatprep.subr.bf16.mxu0 %v1815_v16 }
  0xb7   :  { %1695 = vmatmul.mubr.f32.vlgmr.msra.gmra.mrb[0].mxu0 %v156_v29 }
  0xb8   :  { %1759 = vmatpush3.bf16.msra.mxu0 %v1749_v48  ;;  %1701 = vmatprep.mubr.msk.f32.mxu0 %vm1816_vm0, %v1817_v17 }
  0xb9   :  { %1760 = vmatprep.subr.bf16.mxu0 %v1815_v16 }
  0xbf   :  { %1702 = vmatmul.mubr.f32.vlgmr.msra.gmra.mrb[0].mxu0 %v157_v35 }
  0xc0   :  { %1762 = vmatpush3.bf16.msra.mxu0 %v1761_v58  ;;  %1708 = vmatprep.mubr.msk.f32.mxu0 %vm1816_vm0, %v1817_v17 }
  0xc1   :  { %1763 = vmatprep.subr.bf16.mxu0 %v1815_v16  ;;  %v82_v16 = vpop.permute.xlu0 %81 }
  0xc7   :  { %1709 = vmatmul.mubr.f32.vlgmr.msra.gmra.mrb[0].mxu0 %v155_v24 }
  0xc8   :  { %1765 = vmatpush3.bf16.msra.mxu0 %v1749_v48  ;;  %1715 = vmatprep.mubr.msk.f32.mxu0 %vm1816_vm0, %v1817_v17  ;;  %v651_v17 = vand.u32 4294901760, %v650_v15 }
  0xca   :  { %v652_v21 = vsub.f32 %v650_v15, %v651_v17 }
  0xcc   :  { %v653_v25 = vand.u32 4294901760, %v652_v21 }
  0xcf   :  { %1716 = vmatmul.mubr.f32.vlgmr.msra.gmra.mrb[0].mxu0 %v155_v24 }
 0x1a2   :  { %v543_v18 = vpop.f32.mrb[0].mxu0 }
 0x1a3   :  { %v1766_v19 = vadd.f32 %v543_v18, %v82_v16  ;;  %v1717_v20 = vpop.f32.mrb[1].mxu0 }
 0x1a5   :  { %v547_v22 = vmax.f32 %v1766_v19, 0.0 }
 0x1a7   :  { %v571_v23 = vsel %vm569_vm6, %v547_v22, 0 }
 0x1a8   :  { %v574_v24 = vand.u32 4294901760, %v571_v23 }
 0x1aa   :  { %v661_v26 = vsub.f32 %v571_v23, %v574_v24  ;;  %1718 = vmatprep.subr.mxu1 %v574_v24 }
 0x1ab   :  { %1719 = vmatpush3.msra.mxu1 %v574_v24 }
 0x1ac   :  { %1721 = vmatmul.mubr.f32.vlgmr.msra.gmra.mrb[0].mxu1 %v653_v25  ;;  %v662_v27 = vand.u32 4294901760, %v661_v26 }
 0x1ad   :  { %1725 = vmatprep.mubr.f32.mxu1 %v639_v63 }
 0x1ae   :  { %v663_v28 = vsub.f32 %v661_v26, %v662_v27 }
 0x1b0   :  { %v664_v29 = vand.u32 4294901760, %v663_v28 }
 0x1b2   :  { %1723 = vmatprep.subr.mxu1 %v664_v29 }
 0x1b3   :  { %1724 = vmatpush3.msra.mxu1 %v664_v29 }
 0x1b4   :  { %1726 = vmatmul.mubr.f32.vlgmr.msra.gmra.mrb[0].mxu1 %v649_v14  ;;  %1728 = vmatprep.subr.mxu1 %v661_v26 }
 0x1b5   :  { %1729 = vmatpush3.msra.mxu1 %v661_v26  ;;  %1730 = vmatprep.mubr.f32.mxu1 %v640_v3 }
 0x1b6   :  { %1733 = vmatprep.subr.mxu1 %v574_v24 }
 0x1bc   :  { %1731 = vmatmul.mubr.f32.vlgmr.msra.gmra.mrb[0].mxu1 %v650_v15 }
 0x1bd   :  { %1734 = vmatpush3.msra.mxu1 %v574_v24  ;;  %1735 = vmatprep.mubr.f32.mxu1 %v641_v7 }
 0x1be   :  { %1738 = vmatprep.subr.mxu1 %v662_v27 }
 0x1c4   :  { %1736 = vmatmul.mubr.f32.vlgmr.msra.gmra.mrb[0].mxu1 %v651_v17 }
 0x1c5   :  { %1739 = vmatpush3.msra.mxu1 %v662_v27  ;;  %1740 = vmatprep.mubr.f32.mxu1 %v639_v63 }
 0x1c6   :  { %1743 = vmatprep.subr.mxu1 %v574_v24 }
 0x1cc   :  { %1741 = vmatmul.mubr.f32.vlgmr.msra.gmra.mrb[0].mxu1 %v649_v14 }
 0x1cd   :  { %1744 = vmatpush3.msra.mxu1 %v574_v24  ;;  %1745 = vmatprep.mubr.f32.mxu1 %v639_v63 }
 0x1d4   :  { %1746 = vmatmul.mubr.f32.vlgmr.msra.gmra.mrb[0].mxu1 %v649_v14 }
 0x2a7   :  { %v1747_v31 = vpop.f32.mrb[0].mxu1 }
 0x2a8   :  { %v1052_v32 = vpop.f32.mrb[1].mxu1  ;;  %v1767_v35 = vadd.f32 %v1747_v31, %v560_v34 }
 0x2a9   :  { %v1768_v33 = vadd.f32 %v1052_v32, %v555_v30 }
 0x2ab   :  { %1064 = vrot.lane.b32.xlu1 %v1768_v33, %s1819_s3 }
 0x2af   :  { %1066 = vrot.lane.b32.xlu1 %v1767_v35, %s1819_s3 }
 0x31d   :  { %v1065_v37 = vpop.permute.xlu1 %1064 }
 0x31e   :  { %v1070_v38 = vadd.f32 %v1768_v33, %v1065_v37 }
 0x320   :  { %v1072_v39 = vmul.f32 0.5, %v1070_v38 }
 0x321   :  { %v1067_v40 = vpop.permute.xlu1 %1066 }
 0x322   :  { %v1071_v41 = vadd.f32 %v1767_v35, %v1067_v40  ;;  %1807 = vtanh.f32 %v1072_v39 }
 0x324   :  { %v1073_v42 = vmul.f32 0.5, %v1071_v41 }
 0x326   :  { %1809 = vtanh.f32 %v1073_v42 }
 0x32c   :  { %v1808_v43 = vpop.eup %1807 }
 0x32d   :  { %v1076_v46 = vadd.f32 1.0, %v1808_v43 }
 0x32f   :  { %v1078_v48 = vmul.f32 0.5, %v1076_v46 }
 0x330   :  { %v1810_v44 = vpop.eup %1809 }
 0x331   :  { %v1077_v45 = vadd.f32 1.0, %v1810_v44 }
 0x333   :  { %v1079_v47 = vmul.f32 0.5, %v1077_v45 }
 0x335   :  { %1087 = vperm.xlu1 %1804, %v1079_v47  }
 0x339   :  { %1082 = vperm.xlu1 %1804, %v1078_v48  }
 0x33d   :  { %1805 = vset.pattern.permute.xlu1 %v1820_v36 }
 0x33e   :  { %1134 = vperm.xlu1 %1805, %v1078_v48  }
 0x342   :  { %1138 = vperm.xlu1 %1805, %v1079_v47  }
 0x3b4   :  { %v1088_v49 = vpop.permute.xlu1 %1087 }
 0x3b5   :  { %v1967_v51 = vmul.f32 %v1088_v49, %v1911_v8  ;;  %v1970_v52 = vmul.f32 %v1088_v49, %v1916_v9 }
 0x3b8   :  { %v1083_v50 = vpop.permute.xlu1 %1082 }
 0x3b9   :  { %v1973_v53 = vmul.f32 %v1083_v50, %v1887_v2  ;;  %v1976_v54 = vmul.f32 %v1083_v50, %v1894_v4 }
 0x3bb   :  { %v1098_v55 = vadd.f32 %v1967_v51, %v1973_v53  ;;  %v1105_v56 = vadd.f32 %v1970_v52, %v1976_v54  ;;  %v1115_v57 = vmax.f32 %v1973_v53, %v1967_v51  ;;  %v1122_v8 = vmax.f32 %v1976_v54, %v1970_v52 }
 0x3bd   :  { %v1099_v9 = vrot.slane %v1098_v55, 4  ;;  %v1106_v58 = vrot.slane %v1105_v56, 4  ;;  %v1135_v59 = vpop.permute.xlu1 %1134  ;;  %v1116_v61 = vrot.slane %v1115_v57, 4  ;;  %v1123_v4 = vrot.slane %v1122_v8, 4 }
 0x3be   :  { %v1987_v7 = vmul.f32 %v1877_v0, %v1135_v59  ;;  %v1990_v10 = vmul.f32 %v1882_v1, %v1135_v59 }
 0x3bf   :  { %v1100_v2 = vadd.f32 %v1099_v9, %v1098_v55  ;;  %v1107_v60 = vadd.f32 %v1106_v58, %v1105_v56  ;;  %v1117_v13 = vmax.f32 %v1115_v57, %v1116_v61  ;;  %v1124_v14 = vmax.f32 %v1122_v8, %v1123_v4 }
 0x3c1   :  { %v1101_v62 = vrot.slane %v1100_v2, 2  ;;  %v1108_v63 = vrot.slane %v1107_v60, 2  ;;  %v1139_v3 = vpop.permute.xlu1 %1138  ;;  %v1118_v21 = vrot.slane %v1117_v13, 2  ;;  %v1125_v22 = vrot.slane %v1124_v14, 2 }
 0x3c2   :  { %v1993_v11 = vmul.f32 %v1899_v5, %v1139_v3  ;;  %v1996_v12 = vmul.f32 %v1904_v6, %v1139_v3 }
 0x3c3   :  { %v1102_v17 = vadd.f32 %v1101_v62, %v1100_v2  ;;  %v1109_v5 = vadd.f32 %v1108_v63, %v1107_v60  ;;  %v1119_v33 = vmax.f32 %v1117_v13, %v1118_v21  ;;  %v1126_v34 = vmax.f32 %v1124_v14, %v1125_v22 }
 0x3c4   :  { %v1150_v15 = vadd.f32 %v1993_v11, %v1987_v7  ;;  %v1157_v16 = vadd.f32 %v1996_v12, %v1990_v10  ;;  %v1166_v0 = vmax.f32 %v1987_v7, %v1993_v11  ;;  %v1173_v1 = vmax.f32 %v1990_v10, %v1996_v12 }
 0x3c5   :  { %v1103_v27 = vrot.slane %v1102_v17, 1  ;;  %v1110_v28 = vrot.slane %v1109_v5, 1  ;;  %v1120_v43 = vrot.slane %v1119_v33, 1  ;;  %v1127_v44 = vrot.slane %v1126_v34, 1 }
 0x3c6   :  { %v1151_v18 = vrot.slane %v1150_v15, 4  ;;  %v1158_v19 = vrot.slane %v1157_v16, 4  ;;  %v1167_v6 = vrot.slane %v1166_v0, 4  ;;  %v1174_v20 = vrot.slane %v1173_v1, 4 }
 0x3c7   :  { %v1104_v39 = vadd.f32 %v1103_v27, %v1102_v17  ;;  %v1111_v40 = vadd.f32 %v1110_v28, %v1109_v5  ;;  %v1121_v57 = vmax.f32 %v1119_v33, %v1120_v43  ;;  %v1128_v8 = vmax.f32 %v1126_v34, %v1127_v44  ;;  %v1201_v17 = vld [vmem:[%s2277_s5] ss:$8 sm:$0x3] }
 0x3c8   :  { %v1152_v23 = vadd.f32 %v1151_v18, %v1150_v15  ;;  %v1159_v24 = vadd.f32 %v1158_v19, %v1157_v16  ;;  %v1168_v25 = vmax.f32 %v1166_v0, %v1167_v6  ;;  %v1175_v26 = vmax.f32 %v1173_v1, %v1174_v20  ;;  %v1622_v0 = vld [vmem:[%s2277_s5 + $0x4] ss:$8 sm:$0x3]  ;;  %v1202_v5 = vld [vmem:[%s2278_s6] ss:$8 sm:$0x3] }
 0x3c9   :  { %v1113_v49 = vmul.f32 0.0625, %v1104_v39  ;;  %v1114_v50 = vmul.f32 0.0625, %v1111_v40  ;;  %v1189_v63 = vlaneseq  ;;  %v1623_v1 = vld [vmem:[%s2278_s6 + $0x4] ss:$8 sm:$0x3] }
 0x3ca   :  { %v1153_v29 = vrot.slane %v1152_v23, 2  ;;  %v1160_v30 = vrot.slane %v1159_v24, 2  ;;  %v1169_v31 = vrot.slane %v1168_v25, 2  ;;  %v1176_v32 = vrot.slane %v1175_v26, 2 }
 0x3cb   :  { %v2026_v3 = vshrl.u32 %v1189_v63, 7  ;;  %v1618_v18 = vld [vmem:[%s2277_s5 + $0x2] ss:$8 sm:$0x3] }
 0x3cc   :  { %v1154_v35 = vadd.f32 %v1153_v29, %v1152_v23  ;;  %v1161_v36 = vadd.f32 %v1160_v30, %v1159_v24  ;;  %v1170_v37 = vmax.f32 %v1168_v25, %v1169_v31  ;;  %v1177_v38 = vmax.f32 %v1175_v26, %v1176_v32  ;;  %v1619_v19 = vld [vmem:[%s2278_s6 + $0x2] ss:$8 sm:$0x3]  ;;  %v1616_v6 = vld [vmem:[%s2277_s5 + $0x1] ss:$8 sm:$0x3] }
 0x3cd   :  { %v2029_v13 = vsub.s32 0, %v2026_v3  ;;  %v2032_v14 = vsub.s32 1, %v2026_v3  ;;  %v1617_v20 = vld [vmem:[%s2278_s6 + $0x1] ss:$8 sm:$0x3]  ;;  %vm1191_vm10 = vcmp.lt.s32.totalorder %v2026_v3, 2 }
 0x3ce   :  { %v1155_v41 = vrot.slane %v1154_v35, 1  ;;  %v1162_v42 = vrot.slane %v1161_v36, 1  ;;  %v1171_v47 = vrot.slane %v1170_v37, 1  ;;  %v1178_v48 = vrot.slane %v1177_v38, 1 }
 0x3cf   :  { %v1358_v21 = vrot.slane %v1622_v0, %v2029_v13  ;;  %v1362_v22 = vrot.slane %v1622_v0, %v2032_v14  ;;  %v1369_v23 = vrot.slane %v1623_v1, %v2029_v13  ;;  %v1373_v24 = vrot.slane %v1623_v1, %v2032_v14  ;;  %v1620_v40 = vld [vmem:[%s2277_s5 + $0x3] ss:$8 sm:$0x3] }
 0x3d0   :  { %v1156_v45 = vadd.f32 %v1155_v41, %v1154_v35  ;;  %v1163_v46 = vadd.f32 %v1162_v42, %v1161_v36  ;;  %v1172_v9 = vmax.f32 %v1170_v37, %v1171_v47  ;;  %v1179_v58 = vmax.f32 %v1177_v38, %v1178_v48  ;;  %v1621_v41 = vld [vmem:[%s2278_s6 + $0x3] ss:$8 sm:$0x3]  ;;  %v1625_v47 = vld [vmem:[%s2278_s6 + $0x5] ss:$8 sm:$0x3] }
 0x3d1   :  { %v2067_v25 = vand.u32 127, %v1189_v63  ;;  %v1209_v26 = vrot.slane %v1201_v17, %v2029_v13  ;;  %v1213_v27 = vrot.slane %v1201_v17, %v2032_v14  ;;  %v1220_v30 = vrot.slane %v1202_v5, %v2029_v13 }
 0x3d2   :  { %v1164_v55 = vmul.f32 0.0625, %v1156_v45  ;;  %v1165_v56 = vmul.f32 0.0625, %v1163_v46  ;;  %v1224_v31 = vrot.slane %v1202_v5, %v2032_v14  ;;  %v1287_v32 = vrot.slane %v1618_v18, %v2029_v13  ;;  %v1624_v46 = vld [vmem:[%s2277_s5 + $0x5] ss:$8 sm:$0x3] }
 0x3d3   :  { %v1298_v33 = vrot.slane %v1619_v19, %v2029_v13  ;;  %v1291_v34 = vrot.slane %v1618_v18, %v2032_v14  ;;  %v1302_v35 = vrot.slane %v1619_v19, %v2032_v14  ;;  %v1248_v36 = vrot.slane %v1616_v6, %v2029_v13 }
 0x3d4   :  { %v1181_v59 = vsel %vm1180_vm7, %v1113_v49, %v1164_v55  ;;  %v1182_v2 = vsel %vm1180_vm7, %v1114_v50, %v1165_v56  ;;  %v1259_v37 = vrot.slane %v1617_v20, %v2029_v13  ;;  %vm1276_vm11 = vcmp.lt.s32.totalorder %v2067_v25, 15 }
 0x3d5   :  { %v1184_v60 = vsel %vm1183_vm8, %v1181_v59, %v1121_v57  ;;  %v1185_v61 = vsel %vm1183_vm8, %v1182_v2, %v1128_v8  ;;  %vm1198_vm12 = vcmp.lt.s32.totalorder %v2067_v25, 17  ;;  %v2095_v42 = vsel %vm1191_vm10, %v1358_v21, %v1369_v23  ;;  %v1626_v57 = vld [vmem:[%s2277_s5 + $0x6] ss:$8 sm:$0x3] }
 0x3d6   :  { %v2006_v4 = vsel %vm1186_vm9, %v1184_v60, %v1172_v9  ;;  %v2008_v62 = vsel %vm1186_vm9, %v1185_v61, %v1179_v58  ;;  %v2099_v43 = vsel %vm1191_vm10, %v1209_v26, %v1220_v30  ;;  %v2103_v44 = vsel %vm1191_vm10, %v1213_v27, %v1224_v31  ;;  %v1627_v8 = vld [vmem:[%s2278_s6 + $0x6] ss:$8 sm:$0x3]  ;;  %v1628_v60 = vld [vmem:[%s2277_s5 + $0x7] ss:$8 sm:$0x3] }
 0x3d7   :  { %1194 = vrot.lane.b32.xlu1 %v2008_v62, %s1821_s4  ;;  %1192 = vrot.lane.b32.xlu0 %v2006_v4, %s1821_s4  ;;  %v1305_v45 = vsel %vm1191_vm10, %v1287_v32, %v1298_v33  ;;  %v1377_v48 = vsel %vm1191_vm10, %v1362_v22, %v1373_v24  ;;  %v1306_v49 = vsel %vm1191_vm10, %v1291_v34, %v1302_v35  ;;  %vm1237_vm13 = vcmp.lt.s32.totalorder %v2067_v25, 16  ;;  %v1629_v61 = vld [vmem:[%s2278_s6 + $0x7] ss:$8 sm:$0x3] }
 0x3d8   :  { %v1252_v50 = vrot.slane %v1616_v6, %v2032_v14  ;;  %v1263_v55 = vrot.slane %v1617_v20, %v2032_v14  ;;  %v2122_v56 = vsel %vm1191_vm10, %v1248_v36, %v1259_v37  ;;  %v1326_v9 = vrot.slane %v1620_v40, %v2029_v13  ;;  %v1630_v37 = vld [vmem:[%s2277_s5 + $0x10] ss:$8 sm:$0x3] }
 0x3d9   :  { %v1330_v58 = vrot.slane %v1620_v40, %v2032_v14  ;;  %v1337_v59 = vrot.slane %v1621_v41, %v2029_v13  ;;  %v1341_v2 = vrot.slane %v1621_v41, %v2032_v14  ;;  %v1397_v1 = vrot.slane %v1624_v46, %v2029_v13 }
 0x3da   :  { %v1401_v17 = vrot.slane %v1624_v46, %v2032_v14  ;;  %v1408_v5 = vrot.slane %v1625_v47, %v2029_v13  ;;  %v1412_v18 = vrot.slane %v1625_v47, %v2032_v14  ;;  %v1436_v19 = vrot.slane %v1626_v57, %v2029_v13 }
 0x3db   :  { %1274 = vrot.lane.b32.xlu1 %v2008_v62, %s1822_s30  ;;  %1272 = vrot.lane.b32.xlu0 %v2006_v4, %s1822_s30  ;;  %v1440_v6 = vrot.slane %v1626_v57, %v2032_v14  ;;  %v1447_v20 = vrot.slane %v1627_v8, %v2029_v13  ;;  %v1451_v21 = vrot.slane %v1627_v8, %v2032_v14  ;;  %vm1315_vm14 = vcmp.lt.s32.totalorder %v2067_v25, 1 }
 0x3dc   :  { %v1475_v22 = vrot.slane %v1628_v60, %v2029_v13  ;;  %v1479_v23 = vrot.slane %v1628_v60, %v2032_v14  ;;  %v1486_v24 = vrot.slane %v1629_v61, %v2029_v13  ;;  %v1490_v26 = vrot.slane %v1629_v61, %v2032_v14 }
 0x3dd   :  { %v1267_v27 = vsel %vm1191_vm10, %v1252_v50, %v1263_v55  ;;  %v1344_v30 = vsel %vm1191_vm10, %v1326_v9, %v1337_v59  ;;  %v1379_v31 = vmul.f32 %v1377_v48, %v2008_v62  ;;  %v1345_v32 = vsel %vm1191_vm10, %v1330_v58, %v1341_v2 }
 0x3de   :  { %vm1386_vm15 = vcmp.lt.s32.totalorder %v2067_v25, 127  ;;  %v1415_v34 = vsel %vm1191_vm10, %v1397_v1, %v1408_v5  ;;  %v1416_v35 = vsel %vm1191_vm10, %v1401_v17, %v1412_v18  ;;  %vm1425_vm0 = vcmp.lt.s32.totalorder %v2067_v25, 113 }
 0x3df   :  { %1235 = vrot.lane.b32.xlu1 %v2008_v62, %s1823_s9  ;;  %1233 = vrot.lane.b32.xlu0 %v2006_v4, %s1823_s9  ;;  %v1454_v41 = vsel %vm1191_vm10, %v1436_v19, %v1447_v20  ;;  %v1455_v46 = vsel %vm1191_vm10, %v1440_v6, %v1451_v21  ;;  %vm1464_vm1 = vcmp.lt.s32.totalorder %v2067_v25, 112  ;;  %v1493_v47 = vsel %vm1191_vm10, %v1475_v22, %v1486_v24 }
 0x3e0   :  { %v1494_v48 = vsel %vm1191_vm10, %v1479_v23, %v1490_v26  ;;  %v1514_v55 = vrot.slane %v1630_v37, %v2029_v13  ;;  %v1518_v57 = vrot.slane %v1630_v37, %v2032_v14  ;;  %v1378_v26 = vmul.f32 %v2095_v42, %v2006_v4 }
 0x3e1   :  { %vm1503_vm2 = vcmp.lt.s32.totalorder %v2067_v25, 111 }
 0x3e3   :  { %1313 = vrot.lane.b32.xlu1 %v2008_v62, %s1824_s10  ;;  %1311 = vrot.lane.b32.xlu0 %v2006_v4, %s1824_s10 }
 0x3e7   :  { %1384 = vrot.lane.b32.xlu1 %v2008_v62, %s1825_s11  ;;  %1382 = vrot.lane.b32.xlu0 %v2006_v4, %s1825_s11 }
 0x3eb   :  { %1423 = vrot.lane.b32.xlu1 %v2008_v62, %s1826_s12  ;;  %1421 = vrot.lane.b32.xlu0 %v2006_v4, %s1826_s12 }
 0x3ef   :  { %1462 = vrot.lane.b32.xlu1 %v2008_v62, %s1827_s13  ;;  %1460 = vrot.lane.b32.xlu0 %v2006_v4, %s1827_s13 }
 0x3f3   :  { %1501 = vrot.lane.b32.xlu1 %v2008_v62, %s1828_s14  ;;  %1499 = vrot.lane.b32.xlu0 %v2006_v4, %s1828_s14 }
 0x449   :  { %v2034_v15 = vpop.permute.xlu1 %1194  ;;  %v2036_v16 = vpop.permute.xlu0 %1192 }
 0x44a   :  { %v1200_v50 = vsel %vm1198_vm12, %v2034_v15, %v2036_v16 }
 0x44d   :  { %v2071_v28 = vpop.permute.xlu1 %1274  ;;  %v1273_v29 = vpop.permute.xlu0 %1272 }
 0x44e   :  { %v1277_v62 = vsel %vm1276_vm11, %v1273_v29, %v2071_v28  ;;  %v1278_v40 = vsel %vm1276_vm11, %v2071_v28, %v1273_v29  ;;  %v1631_v28 = vld [vmem:[%s2278_s6 + $0x10] ss:$8 sm:$0x3]  ;;  %v1199_v29 = vsel %vm1198_vm12, %v2036_v16, %v2034_v15 }
 0x44f   :  { %v1307_v8 = vmul.f32 %v1305_v45, %v1278_v40  ;;  %v1308_v9 = vmul.f32 %v1306_v49, %v1277_v62  ;;  %v1525_v16 = vrot.slane %v1631_v28, %v2029_v13  ;;  %v1529_v45 = vrot.slane %v1631_v28, %v2032_v14 }
 0x450   :  { %v1229_v49 = vmul.f32 %v2099_v43, %v1200_v50 }
 0x451   :  { %v2083_v38 = vpop.permute.xlu1 %1235  ;;  %v2085_v39 = vpop.permute.xlu0 %1233 }
 0x452   :  { %v1238_v61 = vsel %vm1237_vm13, %v2085_v39, %v2083_v38  ;;  %v1239_v15 = vsel %vm1237_vm13, %v2083_v38, %v2085_v39  ;;  %v1309_v39 = vadd.f32 %v1307_v8, %v1229_v49 }
 0x453   :  { %v1268_v43 = vmul.f32 %v2122_v56, %v1239_v15  ;;  %v1269_v6 = vmul.f32 %v1267_v27, %v1238_v61  ;;  %v1532_v27 = vsel %vm1191_vm10, %v1514_v55, %v1525_v16 }
 0x455   :  { %v1314_v63 = vpop.permute.xlu1 %1313  ;;  %v1312_v0 = vpop.permute.xlu0 %1311 }
 0x456   :  { %v1316_v58 = vsel %vm1315_vm14, %v1312_v0, %v1314_v63  ;;  %v1317_v59 = vsel %vm1315_vm14, %v1314_v63, %v1312_v0  ;;  %v1230_v63 = vmul.f32 %v2103_v44, %v1199_v29 }
 0x457   :  { %v1346_v17 = vmul.f32 %v1344_v30, %v1317_v59  ;;  %v1347_v5 = vmul.f32 %v1345_v32, %v1316_v58 }
 0x458   :  { %v1310_v19 = vadd.f32 %v1308_v9, %v1230_v63 }
 0x459   :  { %v1385_v33 = vpop.permute.xlu1 %1384  ;;  %v1383_v36 = vpop.permute.xlu0 %1382  ;;  %v1349_v56 = vadd.f32 %v1347_v5, %v1269_v6 }
 0x45a   :  { %v1387_v0 = vsel %vm1386_vm15, %v1383_v36, %v1385_v33  ;;  %v1388_v1 = vsel %vm1386_vm15, %v1385_v33, %v1383_v36  ;;  %v1348_v33 = vadd.f32 %v1346_v17, %v1268_v43  ;;  %v1380_v36 = vadd.f32 %v1378_v26, %v1309_v39 }
 0x45b   :  { %v1417_v21 = vmul.f32 %v1415_v34, %v1387_v0  ;;  %v1418_v22 = vmul.f32 %v1416_v35, %v1388_v1  ;;  %v1533_v34 = vsel %vm1191_vm10, %v1518_v57, %v1529_v45  ;;  %v1381_v35 = vadd.f32 %v1379_v31, %v1310_v19 }
 0x45d   :  { %v1424_v2 = vpop.permute.xlu1 %1423  ;;  %v1422_v60 = vpop.permute.xlu0 %1421  ;;  %v1419_v29 = vadd.f32 %v1417_v21, %v1348_v33  ;;  %v1420_v4 = vadd.f32 %v1418_v22, %v1349_v56 }
 0x45e   :  { %v1426_v18 = vsel %vm1425_vm0, %v1422_v60, %v1424_v2  ;;  %v1427_v38 = vsel %vm1425_vm0, %v1424_v2, %v1422_v60 }
 0x45f   :  { %v1456_v30 = vmul.f32 %v1454_v41, %v1426_v18  ;;  %v1457_v32 = vmul.f32 %v1455_v46, %v1427_v38 }
 0x461   :  { %v1463_v44 = vpop.permute.xlu1 %1462  ;;  %v1461_v20 = vpop.permute.xlu0 %1460  ;;  %v1458_v46 = vadd.f32 %v1456_v30, %v1380_v36  ;;  %v1459_v25 = vadd.f32 %v1457_v32, %v1381_v35 }
 0x462   :  { %v1465_v23 = vsel %vm1464_vm1, %v1461_v20, %v1463_v44  ;;  %v1466_v24 = vsel %vm1464_vm1, %v1463_v44, %v1461_v20 }
 0x463   :  { %v1495_v37 = vmul.f32 %v1493_v47, %v1465_v23  ;;  %v1496_v62 = vmul.f32 %v1494_v48, %v1466_v24  ;;  %v1549_v47 = vstv %s2279_s7 }
 0x465   :  { %v1502_v40 = vpop.permute.xlu1 %1501  ;;  %v1500_v28 = vpop.permute.xlu0 %1499  ;;  %v1497_v9 = vadd.f32 %v1495_v37, %v1419_v29  ;;  %v1498_v58 = vadd.f32 %v1496_v62, %v1420_v4 }
 0x466   :  { %v1504_v42 = vsel %vm1503_vm2, %v1500_v28, %v1502_v40  ;;  %v1505_v41 = vsel %vm1503_vm2, %v1502_v40, %v1500_v28 }
 0x467   :  { %v1534_v50 = vmul.f32 %v1532_v27, %v1504_v42  ;;  %v1535_v8 = vmul.f32 %v1533_v34, %v1505_v41 }
 0x469   :  { %v1536_v55 = vadd.f32 %v1534_v50, %v1458_v46  ;;  %v1537_v59 = vadd.f32 %v1535_v8, %v1459_v25 }
 0x46b   :  { %v1538_v3 = vadd.f32 %v1536_v55, %v1497_v9  ;;  %v1539_v57 = vadd.f32 %v1537_v59, %v1498_v58 }
 0x46d   :  { %v1542_v31 = vrot.slane %v1538_v3, 2  ;;  %v1543_v2 = vrot.slane %v1539_v57, 2 }
 0x46f   :  { %v1546_v48 = vadd.f32 %v1542_v31, %v1538_v3  ;;  %v1547_v60 = vadd.f32 %v1543_v2, %v1539_v57 }
 0x471   :  { %v1550_v61 = vadd.f32 %v1549_v47, %v1546_v48  ;;  %v1551_v15 = vadd.f32 %v1549_v47, %v1547_v60 }
 0x473   :  { %v1552_v16 = vmul.f32 0.5, %v1550_v61  ;;  %v1553_v45 = vmul.f32 0.5, %v1551_v15 }
 0x475   :  { %1811 = vtanh.f32 %v1552_v16 }
 0x476   :  { %1813 = vtanh.f32 %v1553_v45 }
 0x47f   :  { %v1812_v49 = vpop.eup %1811 }
 0x480   :  { %v1814_v63 = vpop.eup %1813  ;;  %v1556_v0 = vadd.f32 1.0, %v1812_v49 }
 0x481   :  { %v1557_v1 = vadd.f32 1.0, %v1814_v63 }
 0x482   :  { %v1558_v17 = vmul.f32 0.5, %v1556_v0 }
 0x483   :  { %v1559_v5 = vmul.f32 0.5, %v1557_v1 }
 0x484   :  { %v1567_v18 = vrot.slane %v1558_v17, %v2029_v13  ;;  %v1587_v38 = vrot.slane %v1558_v17, %v2032_v14 }
 0x485   :  { %v1571_v39 = vrot.slane %v1559_v5, %v2029_v13  ;;  %v1591_v19 = vrot.slane %v1559_v5, %v2032_v14 }
 0x486   :  { %v1572_v43 = vmul.f32 %v1567_v18, %v1973_v53  ;;  %v1574_v6 = vmul.f32 %v1567_v18, %v1967_v51  ;;  %v1592_v44 = vmul.f32 %v1587_v38, %v1987_v7  ;;  %v1594_v20 = vmul.f32 %v1587_v38, %v1993_v11 }
 0x487   :  { %v1573_v21 = vmul.f32 %v1571_v39, %v1976_v54  ;;  %v1575_v22 = vmul.f32 %v1571_v39, %v1970_v52  ;;  %v1593_v23 = vmul.f32 %v1591_v19, %v1990_v10  ;;  %v1595_v24 = vmul.f32 %v1591_v19, %v1996_v12 }
 0x488   :  { %1576 = vst [vmem:[%s2280_s8] sm:$0xff] %v1572_v43  ;;  %1578 = vst [vmem:[%s2280_s8 + $0x10] sm:$0xff] %v1574_v6 }
 0x489   :  { %1636 = vst [vmem:[%s2280_s8 + $0x20] sm:$0xff] %v1592_v44  ;;  %1638 = vst [vmem:[%s2280_s8 + $0x30] sm:$0xff] %v1594_v20 }
 0x48a   :  { %1577 = vst [vmem:[%s2280_s8 + $0x8] sm:$0xff] %v1573_v21  ;;  %1579 = vst [vmem:[%s2280_s8 + $0x18] sm:$0xff] %v1575_v22 }
 0x48b   :  { %1637 = vst [vmem:[%s2280_s8 + $0x28] sm:$0xff] %v1593_v23  ;;  %1639 = vst [vmem:[%s2280_s8 + $0x38] sm:$0xff] %v1595_v24 }

</bundles_post_ra>
